<compile_context>
chip_gen: v6e
topology: v6e:2x2x1
jax: 0.10.0
libtpu: 0.0.40
codegen_flags: <defaults>
</compile_context>

<pallas_src>
import functools

import jax
import jax.numpy as jnp
from jax import lax
from jax.experimental import pallas as pl
from jax.experimental.pallas import tpu as pltpu


def _center_loss_kernel(x_ref, ct_ref, invc_ref, csqn_ref, labels_ref, out_ref,
                        *, batch_size, num_classes, block_rows, block_classes,
                        use_bf16_matmul):
    """One (batch tile, class tile) -> per-class partial loss row."""
    eps = jnp.float32(1e-12)                       # F.normalize default eps

    x_in = x_ref[...]                              # (TB, D) native dtype
    ct_in = ct_ref[...]                            # (D, TC) native / bf16
    labels = labels_ref[...]                       # (TB, 1) int32
    inv_c = invc_ref[...]                          # (1, TC) f32, precomputed
    c_sq_n = csqn_ref[...]                         # (1, TC) f32, precomputed

    x32 = x_in.astype(jnp.float32)
    tb = x32.shape[0]
    tc = inv_c.shape[1]

    # Per-row sum of squares + inverse norm (EUP rsqrt, no VALU divide).
    x_sq = jnp.sum(x32 * x32, axis=1, keepdims=True)        # (TB, 1)
    inv_x = lax.rsqrt(jnp.maximum(x_sq, eps * eps))          # (TB, 1)
    x_sq_n = x_sq * inv_x * inv_x                            # (TB, 1)

    # MXU matmul on un-normalized operands; rescale the small (TB, TC) result.
    if use_bf16_matmul:
        a = x_in.astype(jnp.bfloat16)
        b = ct_in                                  # wrapper already cast to bf16
    elif x_in.dtype == ct_in.dtype:
        a, b = x_in, ct_in
    else:
        a, b = x32, ct_in.astype(jnp.float32)      # mixed-dtype corner case
    xc = lax.dot_general(a, b, (((1,), (0,)), ((), ())),
                         preferred_element_type=jnp.float32)  # (TB, TC)
    xc_n = xc * inv_x * inv_c

    # cdist(x_n, c_n, p=2)**2, clamped at 0 against tiny negative round-off.
    distmat = jnp.maximum(x_sq_n + c_sq_n - 2.0 * xc_n, 0.0)  # (TB, TC)

    # Validity masks: padded batch rows and padded class lanes contribute 0.
    row = (pl.program_id(0) * block_rows
           + lax.broadcasted_iota(jnp.int32, (tb, 1), 0))
    valid_row = row < batch_size                              # (TB, 1)
    class_ids = (pl.program_id(1) * block_classes
                 + lax.broadcasted_iota(jnp.int32, (tb, tc), 1))
    valid_class = class_ids < num_classes                     # (TB, TC)

    is_label = labels == class_ids                            # (TB, TC)
    mask_correct = jnp.logical_and(jnp.logical_and(is_label, valid_row),
                                   valid_class)
    mask_incorrect = jnp.logical_and(
        jnp.logical_and(jnp.logical_not(is_label), valid_row), valid_class)

    margin = jnp.maximum(1.0 - distmat, 0.0)                  # relu(1 - d)
    contrib = (jnp.where(mask_correct, distmat, 0.0)
               + 0.5 * jnp.where(mask_incorrect, margin, 0.0))

    # Lane-dense per-class partial (sublane reduce only; class reduce in wrapper).
    out_ref[...] = jnp.sum(contrib, axis=0, keepdims=True).reshape(1, 1, tc)


def center_loss(x, centers, labels, *, block_rows=None, block_classes=None,
                use_bf16_matmul=None):
    """x: (B, D) float, centers: (C, D) float, labels: (B,) int -> scalar loss."""
    B, D = x.shape
    C, Dc = centers.shape
    assert D == Dc, (D, Dc)

    # ---- dtype-aware tiling constants -------------------------------------
    isx = jnp.dtype(x.dtype).itemsize
    sublane = {4: 8, 2: 16, 1: 32}.get(isx, 8)
    lane_c = max(((C + 127) // 128) * 128, 128)

    # bf16 MXU operands only pay off in the compute-bound (large C*D) regime.
    if use_bf16_matmul is None:
        use_bf16_matmul = (jnp.dtype(x.dtype) == jnp.float32
                           and jnp.dtype(centers.dtype) == jnp.float32
                           and C >= 1024 and D >= 1024)
    isc = 2 if use_bf16_matmul else jnp.dtype(centers.dtype).itemsize

    # ---- generation-aware VMEM budget -------------------------------------
    try:
        info = pltpu.get_tpu_info()
        vmem_cap = int(getattr(info, "vmem_capacity_bytes", 64 << 20))
    except Exception:                                   # pragma: no cover
        vmem_cap = 64 << 20
    # ~3/4 of physical: ~96 MiB on v5e/v6e (128 MiB), ~48 MiB on v7x (64 MiB).
    vmem_limit = int(max(16 << 20, min(vmem_cap * 3 // 4, 100 << 20)))

    # ---- class tiling (guarded resident-centers assumption, mainly v7x) ---
    centers_budget = vmem_limit // 3
    if block_classes is None:
        if 2 * D * lane_c * isc <= centers_budget:
            tc = lane_c                               # fully resident centers
        else:
            tc = max(128, ((centers_budget // (2 * D * isc)) // 128) * 128)
            tc = min(tc, lane_c)
    else:
        tc = min(max(128, ((block_classes + 127) // 128) * 128), lane_c)
    grid_c = pl.cdiv(lane_c, tc)
    c_pad = grid_c * tc

    # ---- batch tile from the remaining VMEM budget ------------------------
    per_row = (2 * D * isx                      # double-buffered x tile
               + 2 * 128 * 4                    # labels (lane-padded, 2 bufs)
               + (D * 4 if isx != 4 else 0)     # in-kernel f32 cast of x
               + 8 * tc * 4)                    # (TB, TC) f32 temporaries
    fixed = (2 * D * tc * isc                   # resident / streamed centers
             + 2 * 2 * 8 * tc * 4               # inv_c / c_sq_n rows
             + (4 << 20))                       # headroom
    avail = max(vmem_limit - fixed, per_row * sublane)
    tb = int(avail // per_row)
    if block_rows is not None:
        tb = min(tb, block_rows)
    tb = min(tb, 4096, ((B + sublane - 1) // sublane) * sublane)
    tb = max(sublane, (tb // sublane) * sublane)

    grid_b = pl.cdiv(B, tb)
    b_pad = grid_b * tb

    # ---- host-side padding & hoisted centers statistics --------------------
    x_p = x if b_pad == B else jnp.pad(x, ((0, b_pad - B), (0, 0)))
    labels2d = labels.astype(jnp.int32).reshape(-1, 1)
    labels_p = (labels2d if b_pad == B
                else jnp.pad(labels2d, ((0, b_pad - B), (0, 0)),
                             constant_values=-1))

    eps = jnp.float32(1e-12)
    c32 = centers.astype(jnp.float32)
    c_sq = jnp.sum(c32 * c32, axis=1)                             # (C,)
    inv_c = lax.rsqrt(jnp.maximum(c_sq, eps * eps))               # (C,)
    c_sq_n = c_sq * inv_c * inv_c                                 # (C,)
    inv_c_p = jnp.pad(inv_c, (0, c_pad - C)).reshape(1, c_pad)
    c_sq_n_p = jnp.pad(c_sq_n, (0, c_pad - C)).reshape(1, c_pad)

    centers_t = jnp.pad(centers.T, ((0, 0), (0, c_pad - C)))      # (D, c_pad)
    if use_bf16_matmul:
        centers_t = centers_t.astype(jnp.bfloat16)

    kernel = functools.partial(_center_loss_kernel,
                               batch_size=B, num_classes=C,
                               block_rows=tb, block_classes=tc,
                               use_bf16_matmul=use_bf16_matmul)

    partials = pl.pallas_call(
        kernel,
        out_shape=jax.ShapeDtypeStruct((grid_b, 1, c_pad), jnp.float32),
        grid_spec=pltpu.PrefetchScalarGridSpec(
            num_scalar_prefetch=0,
            grid=(grid_b, grid_c),
            in_specs=[
                pl.BlockSpec((tb, D), lambda g, c: (g, 0)),    # x: streamed
                pl.BlockSpec((D, tc), lambda g, c: (0, c)),    # centers
                pl.BlockSpec((1, tc), lambda g, c: (0, c)),    # inv_c (hoisted)
                pl.BlockSpec((1, tc), lambda g, c: (0, c)),    # c_sq_n (hoisted)
                pl.BlockSpec((tb, 1), lambda g, c: (g, 0)),    # labels: streamed
            ],
            out_specs=pl.BlockSpec((1, 1, tc), lambda g, c: (g, 0, c)),
        ),
        compiler_params=pltpu.CompilerParams(
            dimension_semantics=("parallel", "arbitrary"),
            vmem_limit_bytes=vmem_limit,
        ),
        cost_estimate=pl.CostEstimate(
            flops=int(2 * b_pad * D * c_pad + 4 * b_pad * D + 10 * b_pad * c_pad),
            transcendentals=int(b_pad),
            bytes_accessed=int(isx * b_pad * D + isc * D * c_pad
                               + 4 * b_pad * 128 + 4 * grid_b * c_pad),
        ),
    )(x_p, centers_t, inv_c_p, c_sq_n_p, labels_p)

    return jnp.sum(partials) / jnp.float32(B)


def center_loss_ref(x, centers, labels):
    """Pure-JAX reference mirroring the PyTorch forward."""
    x = x.astype(jnp.float32)
    centers = centers.astype(jnp.float32)
    B = x.shape[0]
    C = centers.shape[0]
    eps = 1e-12
    x_n = x / jnp.maximum(jnp.linalg.norm(x, axis=1, keepdims=True), eps)
    c_n = centers / jnp.maximum(jnp.linalg.norm(centers, axis=1, keepdims=True), eps)
    diff = x_n[:, None, :] - c_n[None, :, :]
    distmat = jnp.sum(diff * diff, axis=-1)
    mask = labels[:, None] == jnp.arange(C)[None, :]
    dist = jnp.where(mask, distmat, 0.0)
    margin = jnp.where(mask, 0.0, jnp.maximum(1.0 - distmat, 0.0))
    return (dist.sum() + 0.5 * margin.sum()) / B


if __name__ == "__main__":
    num_classes = 2
    feat_dim = 256

    key = jax.random.PRNGKey(0)
    kx, kc, kl, kx2, kl2, kx3, kc3, kl3, kx4, kl4 = jax.random.split(key, 10)

    # nn.Parameter(torch.randn(num_classes, feat_dim) * 0.1) — deterministic init.
    centers = jax.random.normal(kc, (num_classes, feat_dim), dtype=jnp.float32) * 0.1

    # Case 1: single-tile path (budget-derived tile clamps to the batch).
    b1 = 8
    x1 = jax.random.normal(kx, (b1, feat_dim), dtype=jnp.float32)
    l1 = jax.random.randint(kl, (b1,), 0, num_classes, dtype=jnp.int32)
    out1 = jax.block_until_ready(center_loss(x1, centers, l1))
    ref1 = center_loss_ref(x1, centers, l1)
    assert jnp.allclose(out1, ref1, rtol=1e-4, atol=1e-4), (out1, ref1)

    # Case 2: multi-tile batch grid with padding (B=20, forced tile=8 -> grid=3).
    b2 = 20
    x2 = jax.random.normal(kx2, (b2, feat_dim), dtype=jnp.float32)
    l2 = jax.random.randint(kl2, (b2,), 0, num_classes, dtype=jnp.int32)
    out2 = jax.block_until_ready(center_loss(x2, centers, l2, block_rows=8))
    ref2 = center_loss_ref(x2, centers, l2)
    assert jnp.allclose(out2, ref2, rtol=1e-4, atol=1e-4), (out2, ref2)

    # Case 3: guarded class-tiling path (C=200, forced class block=128 -> 2 blocks).
    c3, b3 = 200, 24
    centers3 = jax.random.normal(kc3, (c3, feat_dim), dtype=jnp.float32) * 0.1
    x3 = jax.random.normal(kx3, (b3, feat_dim), dtype=jnp.float32)
    l3 = jax.random.randint(kl3, (b3,), 0, c3, dtype=jnp.int32)
    out3 = jax.block_until_ready(
        center_loss(x3, centers3, l3, block_rows=8, block_classes=128))
    ref3 = center_loss_ref(x3, centers3, l3)
    assert jnp.allclose(out3, ref3, rtol=1e-4, atol=1e-4), (out3, ref3)

    # Case 4: bf16 inputs (dtype-aware 16-row sublane tiling + padding).
    b4 = 20
    x4 = jax.random.normal(kx4, (b4, feat_dim), dtype=jnp.float32).astype(jnp.bfloat16)
    l4 = jax.random.randint(kl4, (b4,), 0, num_classes, dtype=jnp.int32)
    out4 = jax.block_until_ready(center_loss(x4, centers, l4, block_rows=16))
    ref4 = center_loss_ref(x4, centers, l4)
    assert jnp.allclose(out4, ref4, rtol=1e-4, atol=1e-4), (out4, ref4)

    print("KERNEL_OK")
</pallas_src>

<mosaic_0001>
module attributes {stable_mosaic.version = 11 : i64} {
  func.func @_center_loss_kernel(%arg0: i32, %arg1: i32, %arg2: memref<8x256xf32, #tpu.memory_space<vmem>>, %arg3: memref<256x128xf32, #tpu.memory_space<vmem>>, %arg4: memref<1x128xf32, #tpu.memory_space<vmem>>, %arg5: memref<1x128xf32, #tpu.memory_space<vmem>>, %arg6: memref<8x1xi32, #tpu.memory_space<vmem>>, %arg7: memref<1x1x128xf32, #tpu.memory_space<vmem>>) attributes {dimension_semantics = [#tpu.dimension_semantics<parallel>, #tpu.dimension_semantics<arbitrary>], iteration_bounds = array<i64: 1, 1>, scalar_prefetch = 0 : i64, scratch_operands = 0 : i64, tpu.core_type = #tpu.core_type<tc>, window_params = [{transform_indices = @transform_0, window_bounds = array<i64: 8, 256>}, {transform_indices = @transform_1, window_bounds = array<i64: 256, 128>}, {transform_indices = @transform_2, window_bounds = array<i64: 1, 128>}, {transform_indices = @transform_3, window_bounds = array<i64: 1, 128>}, {transform_indices = @transform_4, window_bounds = array<i64: 8, 1>}, {transform_indices = @transform_5, window_bounds = array<i64: 1, 1, 128>}]} {
    %c0 = arith.constant 0 : index
    %c0_0 = arith.constant 0 : index
    %0 = vector.load %arg2[%c0, %c0_0] : memref<8x256xf32, #tpu.memory_space<vmem>>, vector<8x256xf32>
    %c0_1 = arith.constant 0 : index
    %c0_2 = arith.constant 0 : index
    %1 = vector.load %arg3[%c0_1, %c0_2] : memref<256x128xf32, #tpu.memory_space<vmem>>, vector<256x128xf32>
    %c0_3 = arith.constant 0 : index
    %c0_4 = arith.constant 0 : index
    %2 = vector.load %arg6[%c0_3, %c0_4] : memref<8x1xi32, #tpu.memory_space<vmem>>, vector<8x1xi32>
    %c0_5 = arith.constant 0 : index
    %c0_6 = arith.constant 0 : index
    %3 = vector.load %arg4[%c0_5, %c0_6] : memref<1x128xf32, #tpu.memory_space<vmem>>, vector<1x128xf32>
    %c0_7 = arith.constant 0 : index
    %c0_8 = arith.constant 0 : index
    %4 = vector.load %arg5[%c0_7, %c0_8] : memref<1x128xf32, #tpu.memory_space<vmem>>, vector<1x128xf32>
    %5 = arith.mulf %0, %0 : vector<8x256xf32>
    %cst = arith.constant dense<0.000000e+00> : vector<8xf32>
    %6 = vector.multi_reduction <add>, %5, %cst [1] : vector<8x256xf32> to vector<8xf32>
    %7 = vector.shape_cast %6 : vector<8xf32> to vector<8x1xf32>
    %cst_9 = arith.constant 9.99999996E-13 : f32
    %cst_10 = arith.constant 9.99999996E-13 : f32
    %8 = arith.mulf %cst_9, %cst_10 : f32
    %9 = vector.broadcast %8 : f32 to vector<8x1xf32>
    %10 = arith.maximumf %7, %9 : vector<8x1xf32>
    %11 = math.rsqrt %10 : vector<8x1xf32>
    %12 = arith.mulf %7, %11 : vector<8x1xf32>
    %13 = arith.mulf %12, %11 : vector<8x1xf32>
    %cst_11 = arith.constant dense<0.000000e+00> : vector<8x128xf32>
    %14 = tpu.matmul %0, %1, %cst_11 {dimension_numbers = #tpu.dot_dimension_numbers<[1], [0], [0], [1], [0, 0, 1, 1], [], []>} : vector<8x256xf32>, vector<256x128xf32>, vector<8x128xf32> -> vector<8x128xf32>
    %15 = vector.broadcast %11 : vector<8x1xf32> to vector<8x128xf32>
    %16 = arith.mulf %14, %15 : vector<8x128xf32>
    %17 = vector.broadcast %3 : vector<1x128xf32> to vector<8x128xf32>
    %18 = arith.mulf %16, %17 : vector<8x128xf32>
    %19 = vector.broadcast %13 : vector<8x1xf32> to vector<8x128xf32>
    %20 = vector.broadcast %4 : vector<1x128xf32> to vector<8x128xf32>
    %21 = arith.addf %19, %20 : vector<8x128xf32>
    %cst_12 = arith.constant 2.000000e+00 : f32
    %22 = vector.broadcast %cst_12 : f32 to vector<8x128xf32>
    %23 = arith.mulf %22, %18 : vector<8x128xf32>
    %24 = arith.subf %21, %23 : vector<8x128xf32>
    %cst_13 = arith.constant 0.000000e+00 : f32
    %25 = vector.broadcast %cst_13 : f32 to vector<8x128xf32>
    %26 = arith.maximumf %24, %25 : vector<8x128xf32>
    %c8_i32 = arith.constant 8 : i32
    %27 = arith.muli %arg0, %c8_i32 : i32
    %28 = tpu.iota {dimensions = array<i32: 0>} : vector<8x1xi32>
    %29 = vector.broadcast %27 : i32 to vector<8x1xi32>
    %30 = arith.addi %29, %28 : vector<8x1xi32>
    %c8_i32_14 = arith.constant 8 : i32
    %31 = vector.broadcast %c8_i32_14 : i32 to vector<8x1xi32>
    %32 = arith.cmpi slt, %30, %31 : vector<8x1xi32>
    %c128_i32 = arith.constant 128 : i32
    %33 = arith.muli %arg1, %c128_i32 : i32
    %34 = tpu.iota {dimensions = array<i32: 1>} : vector<8x128xi32>
    %35 = vector.broadcast %33 : i32 to vector<8x128xi32>
    %36 = arith.addi %35, %34 : vector<8x128xi32>
    %c2_i32 = arith.constant 2 : i32
    %37 = vector.broadcast %c2_i32 : i32 to vector<8x128xi32>
    %38 = arith.cmpi slt, %36, %37 : vector<8x128xi32>
    %39 = vector.broadcast %2 : vector<8x1xi32> to vector<8x128xi32>
    %40 = arith.cmpi eq, %39, %36 : vector<8x128xi32>
    %41 = vector.broadcast %32 : vector<8x1xi1> to vector<8x128xi1>
    %42 = arith.andi %40, %41 : vector<8x128xi1>
    %43 = arith.andi %42, %38 : vector<8x128xi1>
    %cst_15 = arith.constant dense<true> : vector<8x128xi1>
    %44 = arith.xori %40, %cst_15 : vector<8x128xi1>
    %45 = vector.broadcast %32 : vector<8x1xi1> to vector<8x128xi1>
    %46 = arith.andi %44, %45 : vector<8x128xi1>
    %47 = arith.andi %46, %38 : vector<8x128xi1>
    %cst_16 = arith.constant 1.000000e+00 : f32
    %48 = vector.broadcast %cst_16 : f32 to vector<8x128xf32>
    %49 = arith.subf %48, %26 : vector<8x128xf32>
    %cst_17 = arith.constant 0.000000e+00 : f32
    %50 = vector.broadcast %cst_17 : f32 to vector<8x128xf32>
    %51 = arith.maximumf %49, %50 : vector<8x128xf32>
    %cst_18 = arith.constant 0.000000e+00 : f32
    %52 = vector.broadcast %cst_18 : f32 to vector<8x128xf32>
    %53 = arith.select %43, %26, %52 : vector<8x128xi1>, vector<8x128xf32>
    %cst_19 = arith.constant 0.000000e+00 : f32
    %54 = vector.broadcast %cst_19 : f32 to vector<8x128xf32>
    %55 = arith.select %47, %51, %54 : vector<8x128xi1>, vector<8x128xf32>
    %cst_20 = arith.constant 5.000000e-01 : f32
    %56 = vector.broadcast %cst_20 : f32 to vector<8x128xf32>
    %57 = arith.mulf %56, %55 : vector<8x128xf32>
    %58 = arith.addf %53, %57 : vector<8x128xf32>
    %cst_21 = arith.constant dense<0.000000e+00> : vector<128xf32>
    %59 = vector.multi_reduction <add>, %58, %cst_21 [0] : vector<8x128xf32> to vector<128xf32>
    %60 = vector.shape_cast %59 : vector<128xf32> to vector<1x128xf32>
    %61 = vector.shape_cast %60 : vector<1x128xf32> to vector<1x1x128xf32>
    %c0_22 = arith.constant 0 : index
    %c0_23 = arith.constant 0 : index
    %c0_24 = arith.constant 0 : index
    %62 = vector.load %arg7[%c0_22, %c0_23, %c0_24] : memref<1x1x128xf32, #tpu.memory_space<vmem>>, vector<1x1x128xf32>
    tpu.vector_store %arg7[%c0_22, %c0_23, %c0_24], %61 {strides = array<i32>} : memref<1x1x128xf32, #tpu.memory_space<vmem>>, vector<1x1x128xf32>,
    return
  }
  func.func @transform_0(%arg0: i32, %arg1: i32) -> (i32, i32) {
    %c0_i32 = arith.constant 0 : i32
    %c0_i32_0 = arith.constant 0 : i32
    return %arg0, %c0_i32 : i32, i32
  }
  func.func @transform_1(%arg0: i32, %arg1: i32) -> (i32, i32) {
    %c0_i32 = arith.constant 0 : i32
    %c0_i32_0 = arith.constant 0 : i32
    return %c0_i32, %arg1 : i32, i32
  }
  func.func @transform_2(%arg0: i32, %arg1: i32) -> (i32, i32) {
    %c0_i32 = arith.constant 0 : i32
    %c0_i32_0 = arith.constant 0 : i32
    return %c0_i32, %arg1 : i32, i32
  }
  func.func @transform_3(%arg0: i32, %arg1: i32) -> (i32, i32) {
    %c0_i32 = arith.constant 0 : i32
    %c0_i32_0 = arith.constant 0 : i32
    return %c0_i32, %arg1 : i32, i32
  }
  func.func @transform_4(%arg0: i32, %arg1: i32) -> (i32, i32) {
    %c0_i32 = arith.constant 0 : i32
    %c0_i32_0 = arith.constant 0 : i32
    return %arg0, %c0_i32 : i32, i32
  }
  func.func @transform_5(%arg0: i32, %arg1: i32) -> (i32, i32, i32) {
    %c0_i32 = arith.constant 0 : i32
    %c0_i32_0 = arith.constant 0 : i32
    return %arg0, %c0_i32, %arg1 : i32, i32, i32
  }
}

</mosaic_0001>

<bundles_post_ra>
// kernel: tpu_custom_call.1
= control target key start
LH: loop header
LB: loop body
LE: loop exit
PB: predicated region body
PF: predicated region fallthrough
CT: control target
= control target key end

     0   :  { %10 = vsyncpa [#allocation3], 0  ;;  %s401_s0 = inlined_call_operand.hbm [shape: f32[8,256], index: 0, kind: input, shape index: {}]   ;;  %s402_s1 = inlined_call_operand.hbm [shape: f32[256,128], index: 1, kind: input, shape index: {}]   ;;  %s403_s2 = inlined_call_operand.vmem [shape: f32[1,128], index: 2, kind: input, shape index: {}]   ;;  %s404_s3 = inlined_call_operand.vmem [shape: f32[1,128], index: 3, kind: input, shape index: {}]   ;;  %s405_s4 = inlined_call_operand.vmem [shape: s32[8,1], index: 4, kind: input, shape index: {}]   ;;  %s406_s5 = inlined_call_operand.hbm [shape: f32[1,1,128], index: 5, kind: output, shape index: {}]  }
   0x1   :  { %11 = vsyncpa [#allocation6], 0 }
   0x2   :  { %12 = vsyncpa [#allocation4], 0  ;;  %s346_s18 = smov [#allocation2]   ;;  %s347_s20 = smov [#allocation5]  }
   0x3   :  { %s19_s19 = sshll.u32 %s346_s18, 4  ;;  %s28_s21 = sshll.u32 %s347_s20, 4  ;;  %s20_s19 = int_to_ptr.vmem [resolvable:$true] %s19_s19  ;;  %s29_s21 = int_to_ptr.vmem [resolvable:$true] %s28_s21 }
   0x4   :  { %s288_s22 = scalar_lea.vmem %s20_s19, 256  ;;  %p293_p1 = scmp.lt.s32.totalorder %s20_s19, %s20_s19 }
   0x5   :  { %p289_p0 = scmp.ne.s32.totalorder %s20_s19, %s288_s22  ;;  %p294_p2 = scmp.lt.s32.totalorder %s288_s22, %s288_s22 }
   0x7   :  { %p295_p3 = por %p294_p2, %p293_p1 }
   0x9   :  { %p296_p4 = pnand %p295_p3, %p289_p0 }
   0xb   :  { %299 = shalt.err (!%p296_p4)
}
   0xc   :  { %22 = dma.hbm_to_vmem [thread:$0]  %s401_s0, 256, %s20_s19, [#allocation3]  }
   0xd   :  { %s308_s25 = scalar_lea.vmem %s29_s21, 4096  ;;  %p313_p6 = scmp.lt.s32.totalorder %s29_s21, %s29_s21 }
   0xe   :  { %p309_p5 = scmp.ne.s32.totalorder %s29_s21, %s308_s25  ;;  %p314_p7 = scmp.lt.s32.totalorder %s308_s25, %s308_s25 }
  0x10   :  { %p315_p8 = por %p314_p7, %p313_p6 }
  0x12   :  { %p316_p9 = pnand %p315_p8, %p309_p5 }
  0x14   :  { %319 = shalt.err (!%p316_p9)
}
  0x15   :  { %s348_s26 = smov 128   ;;  %s349_s27 = smov 8  }
  0x16   :  { %34 = dma.hbm_to_vmem [thread:$0]  %s402_s1, 4096, %s29_s21, [#allocation6], %s348_s26, %s348_s26, %s349_s27  }
  0x17   :  { %340 = dma.done.wait [#allocation3], 256  }
  0x18   :  { %341 = vsyncadd [#allocation3], 4294967040 }
  0x19   :  { %342 = dma.done.wait [#allocation6], 4096  }
  0x1a   :  { %343 = vsyncadd [#allocation6], 4294963200  ;;  %v350_v0 = vmov 0   ;;  %v80_v1 = vld [vmem:[#allocation5 + $0xf8] sm:$0xff]  ;;  %v79_v3 = vld [vmem:[#allocation5 + $0xf0] sm:$0xff]  ;;  %v188_v47 = vlaneseq  ;;  %vm351_vm1 = vmmov 1  }
  0x1b   :  { %277 = vset.pattern.permute.xlu0 %v350_v0  ;;  %v64_v2 = vld [vmem:[#allocation5 + $0x78] sm:$0xff]  ;;  %235 = vmatprep.subr.mxu0 %v80_v1  ;;  %v63_v4 = vld [vmem:[#allocation5 + $0x70] sm:$0xff]  ;;  %v78_v5 = vld [vmem:[#allocation5 + $0xe8] sm:$0xff] }
  0x1c   :  { %236 = vmatpush3.msra.mxu0 %v64_v2  ;;  %v62_v6 = vld [vmem:[#allocation5 + $0x68] sm:$0xff]  ;;  %v77_v7 = vld [vmem:[#allocation5 + $0xe0] sm:$0xff]  ;;  %v76_v9 = vld [vmem:[#allocation5 + $0xd8] sm:$0xff]  ;;  %v189_v52 = vand.u32 127, %v188_v47 }
  0x1d   :  { %237 = vmatprep.subr.mxu0 %v79_v3  ;;  %v61_v8 = vld [vmem:[#allocation5 + $0x60] sm:$0xff]  ;;  %v60_v10 = vld [vmem:[#allocation5 + $0x58] sm:$0xff]  ;;  %v75_v11 = vld [vmem:[#allocation5 + $0xd0] sm:$0xff] }
  0x1e   :  { %238 = vmatpush3.msra.mxu0 %v63_v4  ;;  %v59_v12 = vld [vmem:[#allocation5 + $0x50] sm:$0xff]  ;;  %v74_v13 = vld [vmem:[#allocation5 + $0xc8] sm:$0xff]  ;;  %v48_v14 = vld [vmem:[#allocation2 + $0x8] sm:$0xff]  ;;  %vm192_vm3 = vcmp.lt.s32.totalorder %v189_v52, 2 }
  0x1f   :  { %239 = vmatprep.subr.mxu0 %v78_v5  ;;  %v58_v15 = vld [vmem:[#allocation5 + $0x48] sm:$0xff]  ;;  %v85_v16 = vmul.f32 %v48_v14, %v48_v14  ;;  %157 = vmatprep.mubr.f32.mxu0 %v48_v14  ;;  %v47_v17 = vld [vmem:[#allocation2] sm:$0xff]  ;;  %v73_v18 = vld [vmem:[#allocation5 + $0xc0] sm:$0xff] }
  0x20   :  { %240 = vmatpush3.msra.mxu0 %v62_v6  ;;  %v84_v19 = vmul.f32 %v47_v17, %v47_v17  ;;  %v57_v20 = vld [vmem:[#allocation5 + $0x40] sm:$0xff]  ;;  %v72_v21 = vld [vmem:[#allocation5 + $0xb8] sm:$0xff]  ;;  %v71_v24 = vld [vmem:[#allocation5 + $0xb0] sm:$0xff] }
  0x21   :  { %241 = vmatprep.subr.mxu0 %v77_v7  ;;  %v56_v23 = vld [vmem:[#allocation5 + $0x38] sm:$0xff]  ;;  %v55_v25 = vld [vmem:[#allocation5 + $0x30] sm:$0xff]  ;;  %v70_v26 = vld [vmem:[#allocation5 + $0xa8] sm:$0xff] }
  0x22   :  { %242 = vmatpush3.msra.mxu0 %v61_v8  ;;  %v86_v22 = vadd.f32 %v85_v16, %v84_v19  ;;  %v54_v27 = vld [vmem:[#allocation5 + $0x28] sm:$0xff]  ;;  %v69_v28 = vld [vmem:[#allocation5 + $0xa0] sm:$0xff]  ;;  %v68_v30 = vld [vmem:[#allocation5 + $0x98] sm:$0xff] }
  0x23   :  { %243 = vmatprep.subr.mxu0 %v76_v9  ;;  %v53_v29 = vld [vmem:[#allocation5 + $0x20] sm:$0xff]  ;;  %v52_v31 = vld [vmem:[#allocation5 + $0x18] sm:$0xff]  ;;  %v67_v32 = vld [vmem:[#allocation5 + $0x90] sm:$0xff] }
  0x24   :  { %244 = vmatpush3.msra.mxu0 %v60_v10  ;;  %87 = vadd.xlane.f32.xlu0 %v86_v22  ;;  %v51_v33 = vld [vmem:[#allocation5 + $0x10] sm:$0xff]  ;;  %v66_v34 = vld [vmem:[#allocation5 + $0x88] sm:$0xff]  ;;  %v65_v36 = vld [vmem:[#allocation5 + $0x80] sm:$0xff] }
  0x25   :  { %245 = vmatprep.subr.mxu0 %v75_v11  ;;  %v50_v35 = vld [vmem:[#allocation5 + $0x8] sm:$0xff]  ;;  %v49_v37 = vld [vmem:[#allocation5] sm:$0xff]  ;;  %v81_v38 = vld [vmem:[%s405_s4] sm:$0xff] }
  0x26   :  { %246 = vmatpush3.msra.mxu0 %v59_v12  ;;  %v233_v46 = vld [vmem:[%s403_s2] ss:$0 sm:$0xff]  ;;  %s352_s2 = smov [#allocation7]  }
  0x27   :  { %247 = vmatprep.subr.mxu0 %v74_v13  ;;  %v234_v50 = vld [vmem:[%s404_s3] ss:$0 sm:$0xff]  ;;  %s223_s3 = sshll.u32 %s352_s2, 4  ;;  %s224_s3 = int_to_ptr.vmem [resolvable:$true] %s223_s3 }
  0x28   :  { %248 = vmatpush3.msra.mxu0 %v58_v15  ;;  %s320_s4 = scalar_lea.vmem %s224_s3, 16  ;;  %s324_s9 = scalar_lea.vmem %s224_s3, 32 }
  0x29   :  { %249 = vmatprep.subr.mxu0 %v73_v18  ;;  %p321_p10 = scmp.ne.s32.totalorder %s224_s3, %s320_s4  ;;  %p325_p11 = scmp.lt.s32.totalorder %s224_s3, %s224_s3 }
  0x2a   :  { %250 = vmatpush3.msra.mxu0 %v57_v20  ;;  %p326_p12 = scmp.lt.s32.totalorder %s324_s9, %s320_s4 }
  0x2b   :  { %251 = vmatprep.subr.mxu0 %v72_v21 }
  0x2c   :  { %252 = vmatpush3.msra.mxu0 %v56_v23  ;;  %p327_p13 = por %p326_p12, %p325_p11 }
  0x2d   :  { %253 = vmatprep.subr.mxu0 %v71_v24 }
  0x2e   :  { %254 = vmatpush3.msra.mxu0 %v55_v25  ;;  %p328_p0 = pnand %p327_p13, %p321_p10 }
  0x2f   :  { %255 = vmatprep.subr.mxu0 %v70_v26 }
  0x30   :  { %256 = vmatpush3.msra.mxu0 %v54_v27 }
  0x31   :  { %257 = vmatprep.subr.mxu0 %v69_v28 }
  0x32   :  { %258 = vmatpush3.msra.mxu0 %v53_v29 }
  0x33   :  { %259 = vmatprep.subr.mxu0 %v68_v30 }
  0x34   :  { %260 = vmatpush3.msra.mxu0 %v52_v31 }
  0x35   :  { %261 = vmatprep.subr.mxu0 %v67_v32 }
  0x36   :  { %262 = vmatpush3.msra.mxu0 %v51_v33 }
  0x37   :  { %263 = vmatprep.subr.mxu0 %v66_v34 }
  0x38   :  { %264 = vmatpush3.msra.mxu0 %v50_v35 }
  0x39   :  { %265 = vmatprep.subr.mxu0 %v65_v36 }
  0x3a   :  { %266 = vmatpush3.msra.mxu0 %v49_v37  ;;  %194 = vperm.xlu0 %277, %v81_v38  }
  0x3b   :  { %158 = vmatmul.mubr.f32.vlgmr.msra.gmra.mxu0 %v47_v17 }
  0xad   :  { %v88_v39 = vpop.xlane.xlu0 %87 }
  0xae   :  { %v89_v40 = vmax.f32 %v88_v39, 1e-24 }
  0xb0   :  { %278 = vrsqrt.f32 %v89_v40 }
  0xb5   :  { %v195_v55 = vpop.permute.xlu0 %194 }
  0xb6   :  { %vm196_vm0 = vcmp.eq.s32.totalorder %v195_v55, %v189_v52 }
  0xb7   :  { %vm201_vm2 = vmxor %vm196_vm0, %vm351_vm1 }
  0xb8   :  { %vm203_vm4 = vmand %vm201_vm2, %vm192_vm3 }
  0xb9   :  { %vm200_vm5 = vmand %vm196_vm0, %vm192_vm3 }
  0xbd   :  { %v279_v41 = vpop.eup %278 }
  0xbe   :  { %v91_v43 = vmul.f32 %v279_v41, %v88_v39 }
  0xc0   :  { %v92_v48 = vmul.f32 %v279_v41, %v91_v43 }
  0xc2   :  { %v177_v53 = vadd.f32 %v234_v50, %v92_v48 }
  0xfb   :  { %v267_v42 = vpop.f32.mrf.mxu0 }
  0xfd   :  { %v268_v44 = vpop.f32.mrf.mxu0 }
  0xfe   :  { %v269_v45 = vadd.f32 %v268_v44, %v267_v42 }
 0x100   :  { %v163_v49 = vmul.f32 %v279_v41, %v269_v45 }
 0x102   :  { %v170_v51 = vmul.f32 %v233_v46, %v163_v49 }
 0x104   :  { %v178_v54 = vmul.f32 2.0, %v170_v51 }
 0x106   :  { %v179_v56 = vsub.f32 %v177_v53, %v178_v54 }
 0x108   :  { %v180_v57 = vmax.f32 %v179_v56, 0.0 }
 0x10a   :  { %v204_v58 = vsub.f32 1.0, %v180_v57  ;;  %v206_v62 = vsel %vm200_vm5, %v180_v57, 0.0 }
 0x10c   :  { %v205_v59 = vmax.f32 %v204_v58, 0.0 }
 0x10e   :  { %v207_v60 = vsel %vm203_vm4, %v205_v59, 0.0 }
 0x10f   :  { %v208_v61 = vmul.f32 0.5, %v207_v60 }
 0x111   :  { %v209_v63 = vadd.f32 %v208_v61, %v206_v62 }
 0x113   :  { %v210_v0 = vrot.slane %v209_v63, 4 }
 0x115   :  { %v211_v1 = vadd.f32 %v210_v0, %v209_v63 }
 0x117   :  { %v212_v2 = vrot.slane %v211_v1, 2 }
 0x119   :  { %v213_v3 = vadd.f32 %v212_v2, %v211_v1 }
 0x11b   :  { %v214_v4 = vrot.slane %v213_v3, 1 }
 0x11d   :  { %v215_v5 = vadd.f32 %v214_v4, %v213_v3 }
 0x11f   :  { %216 = vst [vmem:[#allocation7] sm:$0x1] %v215_v5 }
 0x120   :  { %331 = shalt.err (!%p328_p0)
}
 0x121   :  { %226 = dma.vmem_to_hbm [thread:$0]  %s224_s3, 16, %s406_s5, [#allocation4]  }
 0x122   :  { %344 = dma.done.wait [#allocation4], 16  }
 0x123   :  { %345 = vsyncadd [#allocation4], 4294967280 }
 0x124   :  { %230 = vsyncpa [#allocation3], 1 }
 0x125   :  { %231 = vsyncpa [#allocation6], 1 }
 0x126   :  { %232 = vsyncpa [#allocation4], 1 }

</bundles_post_ra>
